<compile_context>
chip_gen: v7x
topology: tpu7x:2x2x1
jax: 0.10.0
libtpu: 0.0.40
codegen_flags: <defaults>
</compile_context>

<pallas_src>
import functools

import jax
import jax.numpy as jnp
from jax.experimental import pallas as pl
from jax.experimental.pallas import tpu as pltpu


_VMEM_LIMIT = 32 * 1024 * 1024  # explicit; safe on every TPU generation.


def _pick_tile(total, candidates):
    """Largest candidate that evenly divides `total`, else the full extent."""
    for c in candidates:
        if c <= total and total % c == 0:
            return c
    return total


def _pool_kernel(x_ref, p_ref, *, inv_s):
    # Accumulate the per-row mean over the S (lane) axis; the (R_tile, 1)
    # output block is revisited across the "arbitrary" S grid axis.
    @pl.when(pl.program_id(1) == 0)
    def _():
        p_ref[...] = jnp.zeros_like(p_ref)

    p_ref[...] += jnp.sum(x_ref[...].astype(jnp.float32), axis=1,
                          keepdims=True) * inv_s


def _gate_kernel(p_ref, w1t_ref, b1_ref, w2t_ref, b2_ref, g_ref):
    # p: (B, C) pooled means; FCs are batched over B (RHS is never width 1).
    h = jnp.dot(p_ref[...], w1t_ref[...],
                preferred_element_type=jnp.float32) + b1_ref[...]
    h = jnp.maximum(h, 0.0)                                    # (B, Cr)
    g = jnp.dot(h, w2t_ref[...],
                preferred_element_type=jnp.float32) + b2_ref[...]
    g_ref[...] = jax.nn.sigmoid(g)                             # (B, C)


def _scale_kernel(x_ref, g_ref, o_ref):
    # Excite: broadcast the per-row gate over lanes. Cast the tiny gate down
    # to the input dtype instead of upcasting the whole x tile.
    o_ref[...] = x_ref[...] * g_ref[...].astype(x_ref.dtype)


def se_block_3d(x, w1, b1, w2, b2):
    """SE block forward.

    x:  (B, C, D, H, W)
    w1: (Cr, C), b1: (Cr,)   -- fc1 (PyTorch nn.Linear layout)
    w2: (C, Cr), b2: (C,)    -- fc2
    """
    B, C, D, H, W = x.shape
    S = D * H * W
    R = B * C
    Cr = w1.shape[0]

    xr = x.reshape(R, S)

    r_tile = _pick_tile(R, (256, 128, 64, 32, 16, 8))
    s_tile = _pick_tile(S, (2048, 1024, 512, 256, 128))
    n_r = R // r_tile
    n_s = S // s_tile

    # ---- Pass 1: squeeze (global average pool) -> (R, 1) f32 means. ----
    pooled = pl.pallas_call(
        functools.partial(_pool_kernel, inv_s=1.0 / S),
        out_shape=jax.ShapeDtypeStruct((R, 1), jnp.float32),
        grid_spec=pltpu.PrefetchScalarGridSpec(
            num_scalar_prefetch=0,
            grid=(n_r, n_s),
            in_specs=[pl.BlockSpec((r_tile, s_tile), lambda r, s: (r, s))],
            out_specs=pl.BlockSpec((r_tile, 1), lambda r, s: (r, 0)),
        ),
        compiler_params=pltpu.CompilerParams(
            dimension_semantics=("parallel", "arbitrary"),
            vmem_limit_bytes=_VMEM_LIMIT),
    )(xr)

    # ---- Pass 2: gate = sigmoid(fc2(relu(fc1(pooled)))), all batches at once. ----
    p_bc = pooled.reshape(B, C)
    gate = pl.pallas_call(
        _gate_kernel,
        out_shape=jax.ShapeDtypeStruct((B, C), jnp.float32),
        grid_spec=pltpu.PrefetchScalarGridSpec(
            num_scalar_prefetch=0,
            grid=(1,),
            in_specs=[
                pl.BlockSpec((B, C), lambda i: (0, 0)),     # pooled (B, C)
                pl.BlockSpec((C, Cr), lambda i: (0, 0)),    # W1^T
                pl.BlockSpec((1, Cr), lambda i: (0, 0)),    # b1
                pl.BlockSpec((Cr, C), lambda i: (0, 0)),    # W2^T
                pl.BlockSpec((1, C), lambda i: (0, 0)),     # b2
            ],
            out_specs=pl.BlockSpec((B, C), lambda i: (0, 0)),
        ),
        compiler_params=pltpu.CompilerParams(
            dimension_semantics=("arbitrary",)),
    )(p_bc,
      w1.T.astype(jnp.float32), b1.reshape(1, Cr).astype(jnp.float32),
      w2.T.astype(jnp.float32), b2.reshape(1, C).astype(jnp.float32))

    gate_col = gate.reshape(R, 1)   # row-major: row b*C + c == gate[b, c]

    # ---- Pass 3: excite (channel-wise scale), lane-dense streaming. ----
    # Note: if the caller can donate x, adding input_output_aliases={0: 0}
    # here would let the output reuse x's HBM buffer.
    out = pl.pallas_call(
        _scale_kernel,
        out_shape=jax.ShapeDtypeStruct((R, S), x.dtype),
        grid_spec=pltpu.PrefetchScalarGridSpec(
            num_scalar_prefetch=0,
            grid=(n_r, n_s),
            in_specs=[
                pl.BlockSpec((r_tile, s_tile), lambda r, s: (r, s)),  # x tile
                pl.BlockSpec((r_tile, 1), lambda r, s: (r, 0)),       # gate
            ],
            out_specs=pl.BlockSpec((r_tile, s_tile), lambda r, s: (r, s)),
        ),
        compiler_params=pltpu.CompilerParams(
            dimension_semantics=("parallel", "parallel"),
            vmem_limit_bytes=_VMEM_LIMIT),
    )(xr, gate_col)

    return out.reshape(B, C, D, H, W)


def _reference(x, w1, b1, w2, b2):
    # Pure-JAX reference mirroring the PyTorch forward exactly.
    B, C = x.shape[0], x.shape[1]
    p = jnp.mean(x, axis=(2, 3, 4))                          # (B, C)
    h = jnp.maximum(p @ w1.T + b1, 0.0)                      # (B, Cr)
    g = jax.nn.sigmoid(h @ w2.T + b2)                        # (B, C)
    return x * g.reshape(B, C, 1, 1, 1)


if __name__ == "__main__":
    # SEBlock3D(in_channels=4, activation=nn.ReLU, reduction_ratio=1)
    B, C, D, H, W = 2, 4, 16, 16, 16
    reduction_ratio = 1
    Cr = C // reduction_ratio

    key = jax.random.PRNGKey(0)
    kx, kw1, kb1, kw2, kb2 = jax.random.split(key, 5)

    x = jax.random.normal(kx, (B, C, D, H, W), dtype=jnp.float32)

    # Deterministic PyTorch-Linear-style init (uniform +-1/sqrt(fan_in)).
    bound1 = 1.0 / jnp.sqrt(jnp.float32(C))
    w1 = jax.random.uniform(kw1, (Cr, C), jnp.float32, -bound1, bound1)
    b1 = jax.random.uniform(kb1, (Cr,), jnp.float32, -bound1, bound1)
    bound2 = 1.0 / jnp.sqrt(jnp.float32(Cr))
    w2 = jax.random.uniform(kw2, (C, Cr), jnp.float32, -bound2, bound2)
    b2 = jax.random.uniform(kb2, (C,), jnp.float32, -bound2, bound2)

    out = se_block_3d(x, w1, b1, w2, b2)
    jax.block_until_ready(out)

    ref = _reference(x, w1, b1, w2, b2)
    assert out.shape == (B, C, D, H, W)
    assert jnp.allclose(out, ref, atol=1e-5, rtol=1e-5), "mismatch vs reference"

    print("KERNEL_OK")
</pallas_src>

<mosaic_0001>
module attributes {stable_mosaic.version = 11 : i64} {
  func.func @_pool_kernel(%arg0: i32, %arg1: i32, %arg2: memref<8x2048xf32, #tpu.memory_space<vmem>>, %arg3: memref<8x1xf32, #tpu.memory_space<vmem>>) attributes {dimension_semantics = [#tpu.dimension_semantics<parallel>, #tpu.dimension_semantics<arbitrary>], iteration_bounds = array<i64: 1, 2>, scalar_prefetch = 0 : i64, scratch_operands = 0 : i64, tpu.core_type = #tpu.core_type<tc>, window_params = [{transform_indices = @transform_0, window_bounds = array<i64: 8, 2048>}, {transform_indices = @transform_1, window_bounds = array<i64: 8, 1>}]} {
    %c0_i32 = arith.constant 0 : i32
    %0 = arith.cmpi eq, %arg1, %c0_i32 : i32
    %1 = arith.extui %0 : i1 to i32
    %c0_i32_0 = arith.constant 0 : i32
    %2 = arith.cmpi ne, %1, %c0_i32_0 : i32
    scf.if %2 {
      %cst_7 = arith.constant 0.000000e+00 : f32
      %11 = vector.broadcast %cst_7 : f32 to vector<8x1xf32>
      %c0_8 = arith.constant 0 : index
      %c0_9 = arith.constant 0 : index
      %12 = vector.load %arg3[%c0_8, %c0_9] : memref<8x1xf32, #tpu.memory_space<vmem>>, vector<8x1xf32>
      tpu.vector_store %arg3[%c0_8, %c0_9], %11 {strides = array<i32>} : memref<8x1xf32, #tpu.memory_space<vmem>>, vector<8x1xf32>,
    } else {
    }
    %c0 = arith.constant 0 : index
    %c0_1 = arith.constant 0 : index
    %3 = vector.load %arg3[%c0, %c0_1] : memref<8x1xf32, #tpu.memory_space<vmem>>, vector<8x1xf32>
    %c0_2 = arith.constant 0 : index
    %c0_3 = arith.constant 0 : index
    %4 = vector.load %arg2[%c0_2, %c0_3] : memref<8x2048xf32, #tpu.memory_space<vmem>>, vector<8x2048xf32>
    %cst = arith.constant dense<0.000000e+00> : vector<8xf32>
    %5 = vector.multi_reduction <add>, %4, %cst [1] : vector<8x2048xf32> to vector<8xf32>
    %6 = vector.shape_cast %5 : vector<8xf32> to vector<8x1xf32>
    %cst_4 = arith.constant 2.44140625E-4 : f32
    %7 = vector.broadcast %cst_4 : f32 to vector<8x1xf32>
    %8 = arith.mulf %6, %7 : vector<8x1xf32>
    %9 = arith.addf %3, %8 : vector<8x1xf32>
    %c0_5 = arith.constant 0 : index
    %c0_6 = arith.constant 0 : index
    %10 = vector.load %arg3[%c0_5, %c0_6] : memref<8x1xf32, #tpu.memory_space<vmem>>, vector<8x1xf32>
    tpu.vector_store %arg3[%c0_5, %c0_6], %9 {strides = array<i32>} : memref<8x1xf32, #tpu.memory_space<vmem>>, vector<8x1xf32>,
    return
  }
  func.func @transform_0(%arg0: i32, %arg1: i32) -> (i32, i32) {
    %c0_i32 = arith.constant 0 : i32
    return %arg0, %arg1 : i32, i32
  }
  func.func @transform_1(%arg0: i32, %arg1: i32) -> (i32, i32) {
    %c0_i32 = arith.constant 0 : i32
    %c0_i32_0 = arith.constant 0 : i32
    return %arg0, %c0_i32 : i32, i32
  }
}

</mosaic_0001>

<bundles_post_ra>
// kernel: tpu_custom_call.1
= control target key start
LH: loop header
LB: loop body
LE: loop exit
PB: predicated region body
PF: predicated region fallthrough
CT: control target
= control target key end

     0   :  { %6 = vsyncpa [#allocation3], 0  ;;  %s578_s0 = inlined_call_operand.hbm [shape: f32[8,4096], index: 0, kind: input, shape index: {}]   ;;  %s579_s1 = inlined_call_operand.vmem [shape: f32[8,1], index: 1, kind: output, shape index: {}]  }
   0x1   :  { %8 = vsyncpa [#allocation3 + $0x1], 0  ;;  %s430_s6 = smov 0   ;;  %s432_s7 = smov 0  }
   0x2   :  { %s434_s8 = smov 0   ;;  %s436_s9 = smov 0  }
   0x3   :  { %s438_s10 = smov 0   ;;  %s440_s11 = smov 0  }
   0x4 LB: > { %s267_s12 = sadd.s32 4294967295, %s416_s11   ;;  %s23_s13 = sadd.s32 1, %s412_s10  ;;  %s416_s11 = sphi %s440_s11, %s14_s11   ;;  %s412_s10 = sphi %s438_s10, %s589_s10   ;;  %s408_s9 = sphi %s436_s9, %s588_s9   ;;  %s404_s8 = sphi %s434_s8, %s587_s8   ;;  %s400_s7 = sphi %s432_s7, %s586_s7   ;;  %s396_s6 = sphi %s430_s6, %s585_s6  }
   0x5   : > { %p24_p0 = scmp.ge.s32.totalorder %s23_s13, 2  ;;  %s35_s14 = sadd.s32 1, %s404_s8 }
   0x6   : > { %p42_p1 = scmp.ne.s32.totalorder %s404_s8, %s400_s7  ;;  %p43_p2 = scmp.eq.s32.totalorder %s416_s11, 0 }
   0x7   : > { %s591_s13 = smov (%p24_p0, %s23_s13), 0  ;;  %p48_p4 = scmp.ne.s32.totalorder %s400_s7, %s396_s6 }
   0x8   : > { %p466_p3 = por %p43_p2, %p42_p1  ;;  %s31_s16 = ssub.s32 %s412_s10, %s591_s13 }
   0x9   : > { %p49_p5 = scmp.eq.s32.totalorder %s267_s12, 0  ;;  %p33_p6 = scmp.eq.s32.totalorder %s31_s16, 0 }
   0xa   : > { %p286_p8 = scmp.lt.s32.totalorder %s416_s11, 2  ;;  %s98_s19 = sand.u32 1, %s404_s8  }
   0xb   : > { %p473_p7 = por %p49_p5, %p48_p4  ;;  %s279_s20 = sshll.u32 %s412_s10, 11 }
   0xc   : > { %s479_s18 = scalar_select %p33_p6, %s404_s8, %s35_s14  }
   0xd   : > { %s270_s21 = sshll.u32 %s98_s19, 7  ;;  %s486_s24 = scalar_lea.hbm %s578_s0, %s279_s20 }
   0xe   : > { %s102_s25 = scalar_lea.vmem [#allocation2], %s270_s21  ;;  %p490_p9 = pnand %p286_p8, %p466_p3 }
   0xf   : > { %s112_s26 = sshll.u32 %s102_s25, 4  ;;  %s99_s28 = scalar_lea.sflag [#allocation3], %s98_s19  ;;  %s494_s26 = int_to_ptr.vmem [resolvable:$true] %s112_s26 }
  0x10   : > { %s336_s29 = scalar_lea.hbm %s486_s24, 2048  ;;  %p338_p13 = pneg %p490_p9 }
  0x11   : > { %p337_p12 = scmp.ne.s32.totalorder %s486_s24, %s336_s29  ;;  %s341_s3 = scalar_lea.hbm %s578_s0, 4096 }
  0x12   : > { %p342_p2 = scmp.lt.u32.totalorder %s486_s24, %s578_s0  ;;  %p343_p3 = scmp.lt.u32.totalorder %s341_s3, %s336_s29 }
  0x13   : > { %p339_p0 = pnand %p338_p13, %p337_p12  ;;  %p345_p5 = scmp.lt.u32.totalorder %s336_s29, %s486_s24 }
  0x14   : > { %p344_p4 = por %p343_p3, %p342_p2 }
  0x15   : > { %p340_p1 = pneg %p339_p0 }
  0x16   : > { %p346_p6 = por %p345_p5, %p344_p4 }
  0x18   : > { %p347_p8 = pnand %p346_p6, %p340_p1 }
  0x1a   : > { %350 = shalt.err (!%p347_p8)
}
  0x1b   : > { %s351_s6 = scalar_lea.vmem %s494_s26, 2048  ;;  %s418_s12 = smov [#allocation2]  }
  0x1c   : > { %p352_p12 = scmp.ne.s32.totalorder %s494_s26, %s351_s6  ;;  %s356_s14 = sshll.u32 %s418_s12, 4  ;;  %s357_s14 = int_to_ptr.vmem [resolvable:$false] %s356_s14 }
  0x1d   : > { %s358_s15 = scalar_lea.vmem %s357_s14, 4096  ;;  %p359_p11 = scmp.lt.s32.totalorder %s494_s26, %s357_s14 }
  0x1e   : > { %p354_p0 = pnand %p352_p12, %p338_p13  ;;  %p360_p2 = scmp.lt.s32.totalorder %s358_s15, %s351_s6 }
  0x20   : > { %p355_p10 = pneg %p354_p0  ;;  %p361_p3 = por %p360_p2, %p359_p11 }
  0x22   : > { %p362_p4 = pnand %p361_p3, %p355_p10 }
  0x24   : > { %365 = shalt.err (!%p362_p4)
}
  0x25   : > { %285 = dma.hbm_to_vmem [thread:$0]  (!%p490_p9), %s486_s24, 2048, %s494_s26, %s99_s28  }
  0x26   : > { %p583_p1 = scmp.lt.s32.totalorder %s416_s11, 3  ;;  %p584_p5 = scmp.ge.s32.totalorder %s416_s11, 1 }
  0x28   : > { %p118_p13 = pnand %p584_p5, %p583_p1 }
  0x29   : > { %s123_s16 = sand.u32 (!%p118_p13), 1, %s400_s7  }
  0x2a   : > { %121 = sbr.rel (%p118_p13) target bundleno = 237 (0xed), region = 24  ;;  %s274_s19 = sshll.u32 (!%p118_p13), %s123_s16, 7 }
  0x2b   : > { %s124_s20 = scalar_lea.sflag (!%p118_p13), [#allocation3], %s123_s16  ;;  %s528_s21 = scalar_lea.vmem (!%p118_p13), [#allocation2], %s274_s19 }
  0x31   : > { %391 = dma.done.wait (%p473_p7), %s124_s20, 2048  }
  0x32   : > { %393 = vsyncadd (%p473_p7), %s124_s20, 4294965248  ;;  %p275_p10 = scmp.ne.s32.totalorder %s408_s9, 0 }
  0x33   : > { %vm154_vm0 = vcmask (!%p275_p10), 7168   ;;  %v419_v0 = vmov (!%p275_p10), 0.0  }
  0x34   : > { %153 = sbr.rel (%p275_p10) target bundleno = 59 (0x3b), region = 32  ;;  %155 = vst.msk [vmem:[%s579_s1] sm:$0xff] (!%p275_p10), %vm154_vm0, %v419_v0 }
  0x3b PF: > { %v157_v1 = vld [vmem:[%s528_s21] sm:$0xff]  ;;  %v158_v2 = vld [vmem:[%s528_s21 + $0x8] sm:$0xff]  ;;  %v159_v3 = vld [vmem:[%s528_s21 + $0x10] sm:$0xff]  ;;  %vm192_vm1 = vcmask 7168  }
  0x3c   : > { %v173_v4 = vadd.f32 %v158_v2, %v157_v1  ;;  %v160_v5 = vld [vmem:[%s528_s21 + $0x18] sm:$0xff]  ;;  %v161_v7 = vld [vmem:[%s528_s21 + $0x20] sm:$0xff]  ;;  %v162_v9 = vld [vmem:[%s528_s21 + $0x28] sm:$0xff] }
  0x3d   : > { %v163_v11 = vld [vmem:[%s528_s21 + $0x30] sm:$0xff]  ;;  %v164_v13 = vld [vmem:[%s528_s21 + $0x38] sm:$0xff]  ;;  %v165_v15 = vld [vmem:[%s528_s21 + $0x40] sm:$0xff] }
  0x3e   : > { %v174_v6 = vadd.f32 %v173_v4, %v159_v3  ;;  %v166_v17 = vld [vmem:[%s528_s21 + $0x48] sm:$0xff]  ;;  %v167_v19 = vld [vmem:[%s528_s21 + $0x50] sm:$0xff]  ;;  %v168_v21 = vld [vmem:[%s528_s21 + $0x58] sm:$0xff] }
  0x3f   : > { %v169_v23 = vld [vmem:[%s528_s21 + $0x60] sm:$0xff]  ;;  %v170_v25 = vld [vmem:[%s528_s21 + $0x68] sm:$0xff]  ;;  %v171_v27 = vld [vmem:[%s528_s21 + $0x70] sm:$0xff] }
  0x40   : > { %v175_v8 = vadd.f32 %v174_v6, %v160_v5  ;;  %v172_v29 = vld [vmem:[%s528_s21 + $0x78] sm:$0xff]  ;;  %v156_v32 = vld [vmem:[%s579_s1] sm:$0xff] }
  0x42   : > { %v176_v10 = vadd.f32 %v175_v8, %v161_v7 }
  0x44   : > { %v177_v12 = vadd.f32 %v176_v10, %v162_v9 }
  0x46   : > { %v178_v14 = vadd.f32 %v177_v12, %v163_v11 }
  0x48   : > { %v179_v16 = vadd.f32 %v178_v14, %v164_v13 }
  0x4a   : > { %v180_v18 = vadd.f32 %v179_v16, %v165_v15 }
  0x4c   : > { %v181_v20 = vadd.f32 %v180_v18, %v166_v17 }
  0x4e   : > { %v182_v22 = vadd.f32 %v181_v20, %v167_v19 }
  0x50   : > { %v183_v24 = vadd.f32 %v182_v22, %v168_v21 }
  0x52   : > { %v184_v26 = vadd.f32 %v183_v24, %v169_v23 }
  0x54   : > { %v185_v28 = vadd.f32 %v184_v26, %v170_v25 }
  0x56   : > { %v186_v30 = vadd.f32 %v185_v28, %v171_v27 }
  0x58   : > { %v187_v31 = vadd.f32 %v186_v30, %v172_v29 }
  0x5a   : > { %188 = vadd.xlane.f32.xlu0 %v187_v31 }
  0xe7   : > { %v189_v33 = vpop.xlane.xlu0 %188 }
  0xe8   : > { %v190_v34 = vmul.f32 0.00024414063, %v189_v33 }
  0xea   : > { %v191_v35 = vadd.f32 %v190_v34, %v156_v32 }
  0xec   : > { %193 = vst.msk [vmem:[%s579_s1] sm:$0xff] %vm192_vm1, %v191_v35 }
  0xed PF: > { %s14_s11 = sadd.s32 1, %s416_s11   ;;  %s585_s6 = smov %s400_s7 }
  0xee   : > { %p11_p7 = scmp.ge.s32.totalorder %s14_s11, 4   ;;  %s586_s7 = smov %s404_s8 }
  0xef   : > { %s587_s8 = smov %s479_s18  ;;  %s588_s9 = smov %s412_s10 }
  0xf0   : > { %s589_s10 = smov %s591_s13  ;;  %13 = sbr.rel (!%p11_p7) target bundleno = 4 (0x4), region = 68 }
  0xf7   :  { %213 = vsyncpa [#allocation3], 1 }
  0xf8   :  { %215 = vsyncpa [#allocation3 + $0x1], 1 }

</bundles_post_ra>
